<compile_context>
chip_gen: v6e
topology: v6e:2x2x1
jax: 0.10.0
libtpu: 0.0.40
codegen_flags: <defaults>
</compile_context>

<pallas_src>
import jax
import jax.numpy as jnp
from jax.experimental import pallas as pl
from jax.experimental.pallas import tpu as pltpu

OUT_HW = 256
POINTS_NUM = 68


def _interp_matrix(out_size, in_size):
    """Row-interpolation matrix for bilinear resize with align_corners=True."""
    i = jnp.arange(out_size, dtype=jnp.float32)
    src = i * (in_size - 1) / (out_size - 1)          # align_corners=True mapping
    i0 = jnp.clip(jnp.floor(src).astype(jnp.int32), 0, in_size - 1)
    i1 = jnp.clip(i0 + 1, 0, in_size - 1)
    w1 = src - i0.astype(jnp.float32)
    w0 = 1.0 - w1
    rows = jnp.arange(out_size)
    m = jnp.zeros((out_size, in_size), jnp.float32)
    m = m.at[rows, i0].add(w0)
    m = m.at[rows, i1].add(w1)
    return m


# ---------------- fused diff + pool + landmark-head kernel -------------------
def _lm_kernel(xt_ref, xp_ref, w_ref, o_ref):
    # xt/xp: (TB, C*HW) image tiles, w: (C*HW, LPAD) fused resize+GAP+linear
    # weights, o: (TB, LPAD) landmark difference.  Bias cancels in the
    # difference of two affine heads, so none is needed.
    d = xt_ref[...] - xp_ref[...]                               # (TB, C*HW)
    o_ref[...] = jnp.dot(
        d, w_ref[...], preferred_element_type=jnp.float32
    ).astype(o_ref.dtype)                                       # (TB, LPAD)


# --------------------------------- wrapper -----------------------------------
def landmark_loss(img_true, img_pred, wy, wxT, w_det, b_det, *, tb=8):
    del b_det  # the bias cancels exactly in head(img_true) - head(img_pred)

    B, C, H, W = img_true.shape
    HW = H * W
    K = C * HW
    L = w_det.shape[1]
    LPAD = max(128, pl.cdiv(L, 128) * 128)            # lane-dense head width

    # Exact algebraic fusion of (bilinear resize -> global average pool):
    #   mean(Wy @ X @ WxT) = (mean of Wy rows) @ X @ (mean of WxT cols)
    a = jnp.mean(wy, axis=0)                          # (H,)
    c = jnp.mean(wxT, axis=1)                         # (W,)
    wv = (a[:, None] * c[None, :]).reshape(HW)        # (HW,) combined pool weights

    # Fold the pooling weights into the landmark-head weights (single matmul):
    #   W_fused[c*HW + hw, l] = wv[hw] * w_det[c, l]
    w_fused = (wv[None, :, None] * w_det[:, None, :]).reshape(K, L)
    w_fused = jnp.zeros((K, LPAD), jnp.float32).at[:, :L].set(w_fused)

    # No HBM batch padding: the block equals the full batch when B <= tb,
    # otherwise a ragged last tile relies on masked OOB stores.
    tb_eff = B if B <= tb else tb
    num_tiles = pl.cdiv(B, tb_eff)

    xt = img_true.reshape(B, K).astype(jnp.float32)
    xp = img_pred.reshape(B, K).astype(jnp.float32)

    dlm = pl.pallas_call(
        _lm_kernel,
        out_shape=jax.ShapeDtypeStruct((B, LPAD), jnp.float32),
        grid=(num_tiles,),
        in_specs=[
            pl.BlockSpec((tb_eff, K), lambda i: (i, 0)),
            pl.BlockSpec((tb_eff, K), lambda i: (i, 0)),
            pl.BlockSpec((K, LPAD), lambda i: (0, 0)),
        ],
        out_specs=pl.BlockSpec((tb_eff, LPAD), lambda i: (i, 0)),
        compiler_params=pltpu.CompilerParams(
            dimension_semantics=("parallel",)),
    )(xt, xp, w_fused)

    # Finalize in plain JAX on the tiny (B, LPAD) matrix -- a second kernel
    # launch would cost more than the work itself.  Zero-padded lanes add 0.
    per_sample = jnp.sqrt(jnp.sum(dlm * dlm, axis=-1))          # (B,)
    return jnp.mean(per_sample)


# ------------------------------ pure-JAX reference ---------------------------
def _reference(img_true, img_pred, wy, wxT, w, b):
    def resize(x):
        return jnp.einsum('oh,bchw,wx->bcox', wy, x, wxT)

    def detect(r):
        feat = jnp.mean(r, axis=(2, 3))
        return feat @ w + b

    d = detect(resize(img_true)) - detect(resize(img_pred))
    return jnp.mean(jnp.sqrt(jnp.sum(d * d, axis=1)))


if __name__ == "__main__":
    key = jax.random.PRNGKey(0)
    k1, k2, k3, k4 = jax.random.split(key, 4)

    B, C, H, W = 2, 3, 16, 16                      # small NCHW images
    img_true = jax.random.uniform(k1, (B, C, H, W), jnp.float32)
    img_pred = jax.random.uniform(k2, (B, C, H, W), jnp.float32)

    # separable bilinear interpolation matrices (align_corners=True)
    wy = _interp_matrix(OUT_HW, H)                 # (256, H)
    wxT = _interp_matrix(OUT_HW, W).T              # (W, 256)

    # deterministic synthetic GAP->linear landmark head (see TODO above)
    w_det = 0.1 * jax.random.normal(k3, (C, 2 * POINTS_NUM), jnp.float32)
    b_det = 0.01 * jax.random.normal(k4, (1, 2 * POINTS_NUM), jnp.float32)

    loss = landmark_loss(img_true, img_pred, wy, wxT, w_det, b_det)
    loss = jax.block_until_ready(loss)

    ref = jax.block_until_ready(_reference(img_true, img_pred, wy, wxT, w_det, b_det))
    assert abs(float(loss) - float(ref)) <= 1e-3 + 1e-2 * abs(float(ref)), (
        f"mismatch: pallas={float(loss)} ref={float(ref)}")

    print("KERNEL_OK")
</pallas_src>

<mosaic_0001>
module attributes {stable_mosaic.version = 11 : i64} {
  func.func @_lm_kernel(%arg0: i32, %arg1: memref<2x768xf32, #tpu.memory_space<vmem>>, %arg2: memref<2x768xf32, #tpu.memory_space<vmem>>, %arg3: memref<768x256xf32, #tpu.memory_space<vmem>>, %arg4: memref<2x256xf32, #tpu.memory_space<vmem>>) attributes {dimension_semantics = [#tpu.dimension_semantics<parallel>], iteration_bounds = array<i64: 1>, scalar_prefetch = 0 : i64, scratch_operands = 0 : i64, tpu.core_type = #tpu.core_type<tc>, window_params = [{transform_indices = @transform_0, window_bounds = array<i64: 2, 768>}, {transform_indices = @transform_1, window_bounds = array<i64: 2, 768>}, {pipeline_mode = #tpu.pipeline_mode<synchronous>, transform_indices = @transform_2, window_bounds = array<i64: 768, 256>}, {transform_indices = @transform_3, window_bounds = array<i64: 2, 256>}]} {
    %c0 = arith.constant 0 : index
    %c0_0 = arith.constant 0 : index
    %0 = vector.load %arg1[%c0, %c0_0] : memref<2x768xf32, #tpu.memory_space<vmem>>, vector<2x768xf32>
    %c0_1 = arith.constant 0 : index
    %c0_2 = arith.constant 0 : index
    %1 = vector.load %arg2[%c0_1, %c0_2] : memref<2x768xf32, #tpu.memory_space<vmem>>, vector<2x768xf32>
    %2 = arith.subf %0, %1 : vector<2x768xf32>
    %c0_3 = arith.constant 0 : index
    %c0_4 = arith.constant 0 : index
    %3 = vector.load %arg3[%c0_3, %c0_4] : memref<768x256xf32, #tpu.memory_space<vmem>>, vector<768x256xf32>
    %cst = arith.constant dense<0.000000e+00> : vector<2x256xf32>
    %4 = tpu.matmul %2, %3, %cst {dimension_numbers = #tpu.dot_dimension_numbers<[1], [0], [0], [1], [0, 0, 1, 1], [], []>} : vector<2x768xf32>, vector<768x256xf32>, vector<2x256xf32> -> vector<2x256xf32>
    %c0_5 = arith.constant 0 : index
    %c0_6 = arith.constant 0 : index
    %5 = vector.load %arg4[%c0_5, %c0_6] : memref<2x256xf32, #tpu.memory_space<vmem>>, vector<2x256xf32>
    tpu.vector_store %arg4[%c0_5, %c0_6], %4 {strides = array<i32>} : memref<2x256xf32, #tpu.memory_space<vmem>>, vector<2x256xf32>,
    return
  }
  func.func @transform_0(%arg0: i32) -> (i32, i32) {
    %c0_i32 = arith.constant 0 : i32
    %c0_i32_0 = arith.constant 0 : i32
    return %arg0, %c0_i32 : i32, i32
  }
  func.func @transform_1(%arg0: i32) -> (i32, i32) {
    %c0_i32 = arith.constant 0 : i32
    %c0_i32_0 = arith.constant 0 : i32
    return %arg0, %c0_i32 : i32, i32
  }
  func.func @transform_2(%arg0: i32) -> (i32, i32) {
    %c0_i32 = arith.constant 0 : i32
    %c0_i32_0 = arith.constant 0 : i32
    %c0_i32_1 = arith.constant 0 : i32
    return %c0_i32, %c0_i32_0 : i32, i32
  }
  func.func @transform_3(%arg0: i32) -> (i32, i32) {
    %c0_i32 = arith.constant 0 : i32
    %c0_i32_0 = arith.constant 0 : i32
    return %arg0, %c0_i32 : i32, i32
  }
}

</mosaic_0001>

<bundles_post_ra>
// kernel: tpu_custom_call.1
= control target key start
LH: loop header
LB: loop body
LE: loop exit
PB: predicated region body
PF: predicated region fallthrough
CT: control target
= control target key end

     0   :  { %8 = vsyncpa [#allocation3], 0  ;;  %s662_s0 = inlined_call_operand.hbm [shape: f32[2,768], index: 0, kind: input, shape index: {}]   ;;  %s663_s1 = inlined_call_operand.hbm [shape: f32[2,768], index: 1, kind: input, shape index: {}]   ;;  %s664_s2 = inlined_call_operand.hbm [shape: f32[768,256], index: 2, kind: input, shape index: {}]   ;;  %s665_s3 = inlined_call_operand.hbm [shape: f32[2,256], index: 3, kind: output, shape index: {}]  }
   0x1   :  { %9 = vsyncpa [#allocation6], 0 }
   0x2   :  { %10 = vsyncpa [#allocation4], 0  ;;  %s618_s12 = smov [#allocation5]   ;;  %s619_s14 = smov [#allocation2]  }
   0x3   :  { %s27_s13 = sshll.u32 %s618_s12, 4  ;;  %s17_s15 = sshll.u32 %s619_s14, 4  ;;  %s28_s13 = int_to_ptr.vmem [resolvable:$true] %s27_s13  ;;  %s18_s15 = int_to_ptr.vmem [resolvable:$true] %s17_s15 }
   0x4   :  { %s540_s16 = scalar_lea.vmem %s28_s13, 192  ;;  %p545_p1 = scmp.lt.s32.totalorder %s28_s13, %s28_s13 }
   0x5   :  { %p541_p0 = scmp.ne.s32.totalorder %s28_s13, %s540_s16  ;;  %p546_p2 = scmp.lt.s32.totalorder %s540_s16, %s540_s16 }
   0x7   :  { %p547_p3 = por %p546_p2, %p545_p1 }
   0x9   :  { %p548_p4 = pnand %p547_p3, %p541_p0 }
   0xb   :  { %551 = shalt.err (!%p548_p4)
}
   0xc   :  { %30 = dma.hbm_to_vmem [thread:$0]  %s663_s1, 192, %s28_s13, [#allocation6]  }
   0xd   :  { %s560_s19 = scalar_lea.vmem %s18_s15, 192  ;;  %p565_p6 = scmp.lt.s32.totalorder %s18_s15, %s18_s15 }
   0xe   :  { %p561_p5 = scmp.ne.s32.totalorder %s18_s15, %s560_s19  ;;  %p566_p7 = scmp.lt.s32.totalorder %s560_s19, %s560_s19 }
  0x10   :  { %p567_p8 = por %p566_p7, %p565_p6 }
  0x12   :  { %p568_p9 = pnand %p567_p8, %p561_p5 }
  0x14   :  { %571 = shalt.err (!%p568_p9)
}
  0x15   :  { %20 = dma.hbm_to_vmem [thread:$0]  %s662_s0, 192, %s18_s15, [#allocation3]  }
  0x16   :  { %s620_s22 = smov [#allocation7]  }
  0x17   :  { %s36_s23 = sshll.u32 %s620_s22, 4  ;;  %s37_s23 = int_to_ptr.vmem [resolvable:$true] %s36_s23 }
  0x18   :  { %s580_s24 = scalar_lea.vmem %s37_s23, 24576  ;;  %p585_p11 = scmp.lt.s32.totalorder %s37_s23, %s37_s23 }
  0x19   :  { %p581_p10 = scmp.ne.s32.totalorder %s37_s23, %s580_s24  ;;  %p586_p12 = scmp.lt.s32.totalorder %s580_s24, %s580_s24 }
  0x1b   :  { %p587_p13 = por %p586_p12, %p585_p11 }
  0x1d   :  { %p588_p0 = pnand %p587_p13, %p581_p10 }
  0x1f   :  { %591 = shalt.err (!%p588_p0)
}
  0x20   :  { %s621_s1 = smov 256   ;;  %s622_s25 = smov 16  }
  0x21   :  { %42 = dma.hbm_to_vmem [thread:$0]  %s664_s2, 24576, %s37_s23, [#allocation6], %s621_s1, %s621_s1, %s622_s25  }
  0x22   :  { %612 = dma.done.wait [#allocation3], 192  }
  0x23   :  { %613 = vsyncadd [#allocation3], 4294967104 }
  0x24   :  { %614 = dma.done.wait [#allocation6], 24768  }
  0x25   :  { %615 = vsyncadd [#allocation6], 4294942528  ;;  %v89_v0 = vld [vmem:[#allocation7 + $0xf8] sm:$0xff]  ;;  %v88_v2 = vld [vmem:[#allocation7 + $0xf0] sm:$0xff]  ;;  %s624_s0 = smov [#allocation8]  }
  0x26   :  { %v153_v1 = vld [vmem:[#allocation7 + $0x2f8] sm:$0xff]  ;;  %283 = vmatprep.subr.mxu0 %v89_v0  ;;  %v152_v3 = vld [vmem:[#allocation7 + $0x2f0] sm:$0xff]  ;;  %v87_v4 = vld [vmem:[#allocation7 + $0xe8] sm:$0xff]  ;;  %s514_s2 = sshll.u32 %s624_s0, 4  ;;  %s515_s2 = int_to_ptr.vmem [resolvable:$true] %s514_s2 }
  0x27   :  { %354 = vmatprep.subr.mxu1 %v153_v1  ;;  %v151_v5 = vld [vmem:[#allocation7 + $0x2e8] sm:$0xff]  ;;  %284 = vmatpush1.msra.mxu0 %v88_v2  ;;  %v86_v6 = vld [vmem:[#allocation7 + $0xe0] sm:$0xff]  ;;  %v85_v8 = vld [vmem:[#allocation7 + $0xd8] sm:$0xff]  ;;  %s592_s28 = scalar_lea.vmem %s515_s2, 64  ;;  %p597_p2 = scmp.lt.s32.totalorder %s515_s2, %s515_s2 }
  0x28   :  { %355 = vmatpush1.msra.mxu1 %v152_v3  ;;  %v150_v7 = vld [vmem:[#allocation7 + $0x2e0] sm:$0xff]  ;;  %285 = vmatprep.subr.mxu0 %v87_v4  ;;  %v149_v9 = vld [vmem:[#allocation7 + $0x2d8] sm:$0xff]  ;;  %v84_v10 = vld [vmem:[#allocation7 + $0xd0] sm:$0xff]  ;;  %p593_p1 = scmp.ne.s32.totalorder %s515_s2, %s592_s28  ;;  %p598_p3 = scmp.lt.s32.totalorder %s592_s28, %s592_s28 }
  0x29   :  { %356 = vmatprep.subr.mxu1 %v151_v5  ;;  %v148_v11 = vld [vmem:[#allocation7 + $0x2d0] sm:$0xff]  ;;  %286 = vmatpush1.msra.mxu0 %v86_v6  ;;  %v83_v12 = vld [vmem:[#allocation7 + $0xc8] sm:$0xff]  ;;  %v82_v14 = vld [vmem:[#allocation7 + $0xc0] sm:$0xff] }
  0x2a   :  { %357 = vmatpush1.msra.mxu1 %v150_v7  ;;  %v147_v13 = vld [vmem:[#allocation7 + $0x2c8] sm:$0xff]  ;;  %287 = vmatprep.subr.mxu0 %v85_v8  ;;  %v146_v15 = vld [vmem:[#allocation7 + $0x2c0] sm:$0xff]  ;;  %v81_v16 = vld [vmem:[#allocation7 + $0xb8] sm:$0xff]  ;;  %p599_p4 = por %p598_p3, %p597_p2 }
  0x2b   :  { %358 = vmatprep.subr.mxu1 %v149_v9  ;;  %288 = vmatpush1.msra.mxu0 %v84_v10  ;;  %v145_v17 = vld [vmem:[#allocation7 + $0x2b8] sm:$0xff]  ;;  %v80_v18 = vld [vmem:[#allocation7 + $0xb0] sm:$0xff]  ;;  %v79_v20 = vld [vmem:[#allocation7 + $0xa8] sm:$0xff] }
  0x2c   :  { %359 = vmatpush1.msra.mxu1 %v148_v11  ;;  %289 = vmatprep.subr.mxu0 %v83_v12  ;;  %v144_v19 = vld [vmem:[#allocation7 + $0x2b0] sm:$0xff]  ;;  %v143_v21 = vld [vmem:[#allocation7 + $0x2a8] sm:$0xff]  ;;  %v78_v22 = vld [vmem:[#allocation7 + $0xa0] sm:$0xff]  ;;  %p600_p5 = pnand %p599_p4, %p593_p1 }
  0x2d   :  { %360 = vmatprep.subr.mxu1 %v147_v13  ;;  %290 = vmatpush1.msra.mxu0 %v82_v14  ;;  %v142_v23 = vld [vmem:[#allocation7 + $0x2a0] sm:$0xff]  ;;  %v77_v24 = vld [vmem:[#allocation7 + $0x98] sm:$0xff]  ;;  %v76_v26 = vld [vmem:[#allocation7 + $0x90] sm:$0xff] }
  0x2e   :  { %361 = vmatpush1.msra.mxu1 %v146_v15  ;;  %291 = vmatprep.subr.mxu0 %v81_v16  ;;  %v141_v25 = vld [vmem:[#allocation7 + $0x298] sm:$0xff]  ;;  %v140_v27 = vld [vmem:[#allocation7 + $0x290] sm:$0xff]  ;;  %v75_v28 = vld [vmem:[#allocation7 + $0x88] sm:$0xff] }
  0x2f   :  { %362 = vmatprep.subr.mxu1 %v145_v17  ;;  %292 = vmatpush1.msra.mxu0 %v80_v18  ;;  %v139_v29 = vld [vmem:[#allocation7 + $0x288] sm:$0xff]  ;;  %v74_v30 = vld [vmem:[#allocation7 + $0x80] sm:$0xff]  ;;  %v73_v32 = vld [vmem:[#allocation7 + $0x78] sm:$0xff] }
  0x30   :  { %363 = vmatpush1.msra.mxu1 %v144_v19  ;;  %293 = vmatprep.subr.mxu0 %v79_v20  ;;  %v138_v31 = vld [vmem:[#allocation7 + $0x280] sm:$0xff]  ;;  %v137_v33 = vld [vmem:[#allocation7 + $0x278] sm:$0xff]  ;;  %v72_v34 = vld [vmem:[#allocation7 + $0x70] sm:$0xff] }
  0x31   :  { %364 = vmatprep.subr.mxu1 %v143_v21  ;;  %294 = vmatpush1.msra.mxu0 %v78_v22  ;;  %v136_v35 = vld [vmem:[#allocation7 + $0x270] sm:$0xff]  ;;  %v71_v36 = vld [vmem:[#allocation7 + $0x68] sm:$0xff]  ;;  %v70_v38 = vld [vmem:[#allocation7 + $0x60] sm:$0xff] }
  0x32   :  { %365 = vmatpush1.msra.mxu1 %v142_v23  ;;  %295 = vmatprep.subr.mxu0 %v77_v24  ;;  %v135_v37 = vld [vmem:[#allocation7 + $0x268] sm:$0xff]  ;;  %v134_v39 = vld [vmem:[#allocation7 + $0x260] sm:$0xff]  ;;  %v69_v40 = vld [vmem:[#allocation7 + $0x58] sm:$0xff] }
  0x33   :  { %366 = vmatprep.subr.mxu1 %v141_v25  ;;  %296 = vmatpush1.msra.mxu0 %v76_v26  ;;  %v133_v41 = vld [vmem:[#allocation7 + $0x258] sm:$0xff]  ;;  %v68_v42 = vld [vmem:[#allocation7 + $0x50] sm:$0xff]  ;;  %v67_v44 = vld [vmem:[#allocation7 + $0x48] sm:$0xff] }
  0x34   :  { %367 = vmatpush1.msra.mxu1 %v140_v27  ;;  %297 = vmatprep.subr.mxu0 %v75_v28  ;;  %v132_v43 = vld [vmem:[#allocation7 + $0x250] sm:$0xff]  ;;  %v131_v45 = vld [vmem:[#allocation7 + $0x248] sm:$0xff]  ;;  %v66_v46 = vld [vmem:[#allocation7 + $0x40] sm:$0xff] }
  0x35   :  { %368 = vmatprep.subr.mxu1 %v139_v29  ;;  %298 = vmatpush1.msra.mxu0 %v74_v30  ;;  %v130_v47 = vld [vmem:[#allocation7 + $0x240] sm:$0xff]  ;;  %v65_v48 = vld [vmem:[#allocation7 + $0x38] sm:$0xff]  ;;  %v64_v50 = vld [vmem:[#allocation7 + $0x30] sm:$0xff]  ;;  %v623_v30 = vmov 1983009808  }
  0x36   :  { %369 = vmatpush1.msra.mxu1 %v138_v31  ;;  %299 = vmatprep.subr.mxu0 %v73_v32  ;;  %v129_v49 = vld [vmem:[#allocation7 + $0x238] sm:$0xff]  ;;  %v128_v51 = vld [vmem:[#allocation7 + $0x230] sm:$0xff]  ;;  %v63_v52 = vld [vmem:[#allocation7 + $0x28] sm:$0xff]  ;;  %v254_v31 = vunpack.c.l.s4 %v623_v30  ;;  %v256_v32 = vlaneseq }
  0x37   :  { %370 = vmatprep.subr.mxu1 %v137_v33  ;;  %300 = vmatpush1.msra.mxu0 %v72_v34  ;;  %v127_v53 = vld [vmem:[#allocation7 + $0x228] sm:$0xff]  ;;  %v62_v54 = vld [vmem:[#allocation7 + $0x20] sm:$0xff]  ;;  %v61_v56 = vld [vmem:[#allocation7 + $0x18] sm:$0xff] }
  0x38   :  { %371 = vmatpush1.msra.mxu1 %v136_v35  ;;  %301 = vmatprep.subr.mxu0 %v71_v36  ;;  %v126_v55 = vld [vmem:[#allocation7 + $0x220] sm:$0xff]  ;;  %v125_v57 = vld [vmem:[#allocation7 + $0x218] sm:$0xff]  ;;  %v60_v58 = vld [vmem:[#allocation7 + $0x10] sm:$0xff] }
  0x39   :  { %372 = vmatprep.subr.mxu1 %v135_v37  ;;  %302 = vmatpush1.msra.mxu0 %v70_v38  ;;  %v124_v59 = vld [vmem:[#allocation7 + $0x210] sm:$0xff]  ;;  %v59_v60 = vld [vmem:[#allocation7 + $0x8] sm:$0xff]  ;;  %v58_v62 = vld [vmem:[#allocation7] sm:$0xff] }
  0x3a   :  { %373 = vmatpush1.msra.mxu1 %v134_v39  ;;  %303 = vmatprep.subr.mxu0 %v69_v40  ;;  %v123_v61 = vld [vmem:[#allocation7 + $0x208] sm:$0xff]  ;;  %v122_v63 = vld [vmem:[#allocation7 + $0x200] sm:$0xff]  ;;  %v121_v0 = vld [vmem:[#allocation7 + $0x1f8] sm:$0xff] }
  0x3b   :  { %374 = vmatprep.subr.mxu1 %v133_v41  ;;  %304 = vmatpush1.msra.mxu0 %v68_v42  ;;  %v185_v1 = vld [vmem:[#allocation7 + $0x3f8] sm:$0xff]  ;;  %v120_v2 = vld [vmem:[#allocation7 + $0x1f0] sm:$0xff]  ;;  %v119_v4 = vld [vmem:[#allocation7 + $0x1e8] sm:$0xff] }
  0x3c   :  { %375 = vmatpush1.msra.mxu1 %v132_v43  ;;  %305 = vmatprep.subr.mxu0 %v67_v44  ;;  %v184_v3 = vld [vmem:[#allocation7 + $0x3f0] sm:$0xff]  ;;  %v183_v5 = vld [vmem:[#allocation7 + $0x3e8] sm:$0xff]  ;;  %v118_v6 = vld [vmem:[#allocation7 + $0x1e0] sm:$0xff]  ;;  %v255_v43 = vunpack.c.0.s8 %v254_v31  ;;  %v257_v44 = vshrl.u32 %v256_v32, 7 }
  0x3d   :  { %376 = vmatprep.subr.mxu1 %v131_v45  ;;  %306 = vmatpush1.msra.mxu0 %v66_v46  ;;  %v182_v7 = vld [vmem:[#allocation7 + $0x3e0] sm:$0xff]  ;;  %v117_v8 = vld [vmem:[#allocation7 + $0x1d8] sm:$0xff]  ;;  %v116_v10 = vld [vmem:[#allocation7 + $0x1d0] sm:$0xff] }
  0x3e   :  { %377 = vmatpush1.msra.mxu1 %v130_v47  ;;  %307 = vmatprep.subr.mxu0 %v65_v48  ;;  %v181_v9 = vld [vmem:[#allocation7 + $0x3d8] sm:$0xff]  ;;  %v180_v11 = vld [vmem:[#allocation7 + $0x3d0] sm:$0xff]  ;;  %v115_v12 = vld [vmem:[#allocation7 + $0x1c8] sm:$0xff] }
  0x3f   :  { %378 = vmatprep.subr.mxu1 %v129_v49  ;;  %308 = vmatpush1.msra.mxu0 %v64_v50  ;;  %v179_v13 = vld [vmem:[#allocation7 + $0x3c8] sm:$0xff]  ;;  %v114_v14 = vld [vmem:[#allocation7 + $0x1c0] sm:$0xff]  ;;  %v113_v16 = vld [vmem:[#allocation7 + $0x1b8] sm:$0xff] }
  0x40   :  { %379 = vmatpush1.msra.mxu1 %v128_v51  ;;  %309 = vmatprep.subr.mxu0 %v63_v52  ;;  %v178_v15 = vld [vmem:[#allocation7 + $0x3c0] sm:$0xff]  ;;  %v177_v17 = vld [vmem:[#allocation7 + $0x3b8] sm:$0xff]  ;;  %v112_v18 = vld [vmem:[#allocation7 + $0x1b0] sm:$0xff] }
  0x41   :  { %380 = vmatprep.subr.mxu1 %v127_v53  ;;  %310 = vmatpush1.msra.mxu0 %v62_v54  ;;  %v176_v19 = vld [vmem:[#allocation7 + $0x3b0] sm:$0xff]  ;;  %v111_v20 = vld [vmem:[#allocation7 + $0x1a8] sm:$0xff]  ;;  %v110_v22 = vld [vmem:[#allocation7 + $0x1a0] sm:$0xff]  ;;  %v258_v54 = vsub.s32 %v255_v43, %v257_v44 }
  0x42   :  { %381 = vmatpush1.msra.mxu1 %v126_v55  ;;  %311 = vmatprep.subr.mxu0 %v61_v56  ;;  %v175_v21 = vld [vmem:[#allocation7 + $0x3a8] sm:$0xff]  ;;  %v174_v23 = vld [vmem:[#allocation7 + $0x3a0] sm:$0xff]  ;;  %v109_v24 = vld [vmem:[#allocation7 + $0x198] sm:$0xff] }
  0x43   :  { %382 = vmatprep.subr.mxu1 %v125_v57  ;;  %312 = vmatpush1.msra.mxu0 %v60_v58  ;;  %v173_v25 = vld [vmem:[#allocation7 + $0x398] sm:$0xff]  ;;  %v108_v26 = vld [vmem:[#allocation7 + $0x190] sm:$0xff]  ;;  %v107_v28 = vld [vmem:[#allocation7 + $0x188] sm:$0xff] }
  0x44   :  { %383 = vmatpush1.msra.mxu1 %v124_v59  ;;  %313 = vmatprep.subr.mxu0 %v59_v60  ;;  %v172_v27 = vld [vmem:[#allocation7 + $0x390] sm:$0xff]  ;;  %v171_v29 = vld [vmem:[#allocation7 + $0x388] sm:$0xff]  ;;  %v106_v33 = vld [vmem:[#allocation7 + $0x180] sm:$0xff] }
  0x45   :  { %384 = vmatprep.subr.mxu1 %v123_v61  ;;  %314 = vmatpush1.msra.mxu0 %v58_v62  ;;  %v170_v34 = vld [vmem:[#allocation7 + $0x380] sm:$0xff]  ;;  %v105_v35 = vld [vmem:[#allocation7 + $0x178] sm:$0xff]  ;;  %v52_v37 = vld [vmem:[#allocation2] sm:$0xff] }
  0x46   :  { %385 = vmatpush1.msra.mxu1 %v122_v63  ;;  %315 = vmatprep.subr.mxu0 %v121_v0  ;;  %v169_v36 = vld [vmem:[#allocation7 + $0x378] sm:$0xff]  ;;  %v104_v39 = vld [vmem:[#allocation7 + $0x170] sm:$0xff]  ;;  %v103_v41 = vld [vmem:[#allocation7 + $0x168] sm:$0xff] }
  0x47   :  { %386 = vmatprep.subr.mxu1 %v185_v1  ;;  %316 = vmatpush2.msra.mxu0 %v120_v2  ;;  %v54_v38 = vld [vmem:[#allocation5] sm:$0xff]  ;;  %v167_v42 = vld [vmem:[#allocation7 + $0x368] sm:$0xff]  ;;  %v102_v45 = vld [vmem:[#allocation7 + $0x160] sm:$0xff] }
  0x48   :  { %387 = vmatpush2.msra.mxu1 %v184_v3  ;;  %317 = vmatprep.subr.mxu0 %v119_v4  ;;  %v168_v40 = vld [vmem:[#allocation7 + $0x370] sm:$0xff]  ;;  %v166_v46 = vld [vmem:[#allocation7 + $0x360] sm:$0xff]  ;;  %v56_v47 = vsub.f32 %v52_v37, %v54_v38  ;;  %v101_v48 = vld [vmem:[#allocation7 + $0x158] sm:$0xff] }
  0x49   :  { %388 = vmatprep.subr.mxu1 %v183_v5  ;;  %318 = vmatpush2.msra.mxu0 %v118_v6  ;;  %v165_v49 = vld [vmem:[#allocation7 + $0x358] sm:$0xff]  ;;  %v100_v50 = vld [vmem:[#allocation7 + $0x150] sm:$0xff]  ;;  %v99_v52 = vld [vmem:[#allocation7 + $0x148] sm:$0xff] }
  0x4a   :  { %389 = vmatpush2.msra.mxu1 %v182_v7  ;;  %319 = vmatprep.subr.mxu0 %v117_v8  ;;  %v164_v51 = vld [vmem:[#allocation7 + $0x350] sm:$0xff]  ;;  %v163_v53 = vld [vmem:[#allocation7 + $0x348] sm:$0xff]  ;;  %v98_v55 = vld [vmem:[#allocation7 + $0x140] sm:$0xff]  ;;  %v252_v57 = vcombine.high %v56_v47, %v56_v47  ;;  %v259_v0 = vrot.slane %v56_v47, %v258_v54 }
  0x4b   :  { %390 = vmatprep.subr.mxu1 %v181_v9  ;;  %320 = vmatpush2.msra.mxu0 %v116_v10  ;;  %v162_v56 = vld [vmem:[#allocation7 + $0x340] sm:$0xff]  ;;  %v97_v58 = vld [vmem:[#allocation7 + $0x138] sm:$0xff]  ;;  %v96_v60 = vld [vmem:[#allocation7 + $0x130] sm:$0xff] }
  0x4c   :  { %391 = vmatpush2.msra.mxu1 %v180_v11  ;;  %321 = vmatprep.subr.mxu0 %v115_v12  ;;  %v161_v59 = vld [vmem:[#allocation7 + $0x338] sm:$0xff]  ;;  %v160_v61 = vld [vmem:[#allocation7 + $0x330] sm:$0xff]  ;;  %v95_v62 = vld [vmem:[#allocation7 + $0x128] sm:$0xff]  ;;  %v266_v3 = vrot.slane %v252_v57, %v258_v54  ;;  %v267_v10 = vcombine.high %v259_v0, %v259_v0 }
  0x4d   :  { %392 = vmatprep.subr.mxu1 %v179_v13  ;;  %322 = vmatpush2.msra.mxu0 %v114_v14  ;;  %v159_v63 = vld [vmem:[#allocation7 + $0x328] sm:$0xff]  ;;  %v94_v1 = vld [vmem:[#allocation7 + $0x120] sm:$0xff]  ;;  %v93_v4 = vld [vmem:[#allocation7 + $0x118] sm:$0xff] }
  0x4e   :  { %393 = vmatpush2.msra.mxu1 %v178_v15  ;;  %323 = vmatprep.subr.mxu0 %v113_v16  ;;  %v158_v2 = vld [vmem:[#allocation7 + $0x320] sm:$0xff]  ;;  %v157_v5 = vld [vmem:[#allocation7 + $0x318] sm:$0xff]  ;;  %v92_v6 = vld [vmem:[#allocation7 + $0x110] sm:$0xff]  ;;  %v268_v12 = vcombine.high %v266_v3, %v266_v3 }
  0x4f   :  { %394 = vmatprep.subr.mxu1 %v177_v17  ;;  %324 = vmatpush2.msra.mxu0 %v112_v18  ;;  %v156_v7 = vld [vmem:[#allocation7 + $0x310] sm:$0xff]  ;;  %v91_v8 = vld [vmem:[#allocation7 + $0x108] sm:$0xff]  ;;  %v90_v11 = vld [vmem:[#allocation7 + $0x100] sm:$0xff] }
  0x50   :  { %395 = vmatpush2.msra.mxu1 %v176_v19  ;;  %325 = vmatprep.subr.mxu0 %v111_v20  ;;  %v155_v9 = vld [vmem:[#allocation7 + $0x308] sm:$0xff]  ;;  %v154_v13 = vld [vmem:[#allocation7 + $0x300] sm:$0xff]  ;;  %v217_v14 = vld [vmem:[#allocation7 + $0x4f8] sm:$0xff] }
  0x51   :  { %396 = vmatprep.subr.mxu1 %v175_v21  ;;  %326 = vmatpush2.msra.mxu0 %v110_v22  ;;  %v53_v15 = vld [vmem:[#allocation2 + $0x8] sm:$0xf]  ;;  %v55_v17 = vld [vmem:[#allocation5 + $0x8] sm:$0xf]  ;;  %v215_v18 = vld [vmem:[#allocation7 + $0x4e8] sm:$0xff] }
  0x52   :  { %397 = vmatpush2.msra.mxu1 %v174_v23  ;;  %327 = vmatprep.subr.mxu0 %v109_v24  ;;  %v216_v16 = vld [vmem:[#allocation7 + $0x4f0] sm:$0xff]  ;;  %v57_v19 = vsub.f32 %v53_v15, %v55_v17  ;;  %v214_v20 = vld [vmem:[#allocation7 + $0x4e0] sm:$0xff]  ;;  %v213_v21 = vld [vmem:[#allocation7 + $0x4d8] sm:$0xff] }
  0x53   :  { %398 = vmatprep.subr.mxu1 %v173_v25  ;;  %328 = vmatpush2.msra.mxu0 %v108_v26  ;;  %v212_v23 = vld [vmem:[#allocation7 + $0x4d0] sm:$0xff]  ;;  %v211_v24 = vld [vmem:[#allocation7 + $0x4c8] sm:$0xff]  ;;  %v210_v26 = vld [vmem:[#allocation7 + $0x4c0] sm:$0xff] }
  0x54   :  { %399 = vmatpush2.msra.mxu1 %v172_v27  ;;  %329 = vmatprep.subr.mxu0 %v107_v28  ;;  %v654_v22 = vrot.slane %v57_v19, %v258_v54  ;;  %v209_v27 = vld [vmem:[#allocation7 + $0x4b8] sm:$0xff]  ;;  %v208_v28 = vld [vmem:[#allocation7 + $0x4b0] sm:$0xff]  ;;  %v206_v30 = vld [vmem:[#allocation7 + $0x4a0] sm:$0xff] }
  0x55   :  { %400 = vmatprep.subr.mxu1 %v171_v29  ;;  %330 = vmatpush2.msra.mxu0 %v106_v33  ;;  %v207_v29 = vld [vmem:[#allocation7 + $0x4a8] sm:$0xff]  ;;  %v205_v31 = vld [vmem:[#allocation7 + $0x498] sm:$0xff]  ;;  %v204_v32 = vld [vmem:[#allocation7 + $0x490] sm:$0xff] }
  0x56   :  { %401 = vmatpush2.msra.mxu1 %v170_v34  ;;  %331 = vmatprep.subr.mxu0 %v105_v35  ;;  %v276_v25 = vcombine.high %v654_v22, %v654_v22  ;;  %v203_v33 = vld [vmem:[#allocation7 + $0x488] sm:$0xff]  ;;  %v202_v34 = vld [vmem:[#allocation7 + $0x480] sm:$0xff]  ;;  %v201_v35 = vld [vmem:[#allocation7 + $0x478] sm:$0xff] }
  0x57   :  { %402 = vmatprep.subr.mxu1 %v169_v36  ;;  %332 = vmatpush2.msra.mxu0 %v104_v39  ;;  %v200_v36 = vld [vmem:[#allocation7 + $0x470] sm:$0xff]  ;;  %v199_v37 = vld [vmem:[#allocation7 + $0x468] sm:$0xff]  ;;  %v198_v38 = vld [vmem:[#allocation7 + $0x460] sm:$0xff] }
  0x58   :  { %403 = vmatpush2.msra.mxu1 %v168_v40  ;;  %333 = vmatprep.subr.mxu0 %v103_v41  ;;  %v197_v39 = vld [vmem:[#allocation7 + $0x458] sm:$0xff]  ;;  %v196_v40 = vld [vmem:[#allocation7 + $0x450] sm:$0xff]  ;;  %v195_v41 = vld [vmem:[#allocation7 + $0x448] sm:$0xff] }
  0x59   :  { %404 = vmatprep.subr.mxu1 %v167_v42  ;;  %334 = vmatpush2.msra.mxu0 %v102_v45  ;;  %v194_v42 = vld [vmem:[#allocation7 + $0x440] sm:$0xff]  ;;  %v193_v43 = vld [vmem:[#allocation7 + $0x438] sm:$0xff]  ;;  %v192_v44 = vld [vmem:[#allocation7 + $0x430] sm:$0xff] }
  0x5a   :  { %405 = vmatpush2.msra.mxu1 %v166_v46  ;;  %335 = vmatprep.subr.mxu0 %v101_v48  ;;  %v191_v45 = vld [vmem:[#allocation7 + $0x428] sm:$0xff]  ;;  %v190_v46 = vld [vmem:[#allocation7 + $0x420] sm:$0xff]  ;;  %v189_v47 = vld [vmem:[#allocation7 + $0x418] sm:$0xff] }
  0x5b   :  { %406 = vmatprep.subr.mxu1 %v165_v49  ;;  %336 = vmatpush2.msra.mxu0 %v100_v50  ;;  %v188_v48 = vld [vmem:[#allocation7 + $0x410] sm:$0xff]  ;;  %v187_v49 = vld [vmem:[#allocation7 + $0x408] sm:$0xff]  ;;  %v186_v50 = vld [vmem:[#allocation7 + $0x400] sm:$0xff] }
  0x5c   :  { %407 = vmatpush2.msra.mxu1 %v164_v51  ;;  %337 = vmatprep.subr.mxu0 %v99_v52  ;;  %v249_v51 = vld [vmem:[#allocation7 + $0x5f8] sm:$0xff]  ;;  %v248_v52 = vld [vmem:[#allocation7 + $0x5f0] sm:$0xff]  ;;  %v246_v54 = vld [vmem:[#allocation7 + $0x5e0] sm:$0xff] }
  0x5d   :  { %408 = vmatprep.subr.mxu1 %v163_v53  ;;  %338 = vmatpush2.msra.mxu0 %v98_v55  ;;  %v247_v53 = vld [vmem:[#allocation7 + $0x5e8] sm:$0xff]  ;;  %v245_v55 = vld [vmem:[#allocation7 + $0x5d8] sm:$0xff] }
  0x5e   :  { %409 = vmatpush2.msra.mxu1 %v162_v56  ;;  %339 = vmatprep.subr.mxu0 %v97_v58  ;;  %v244_v56 = vld [vmem:[#allocation7 + $0x5d0] sm:$0xff]  ;;  %v243_v57 = vld [vmem:[#allocation7 + $0x5c8] sm:$0xff]  ;;  %v242_v58 = vld [vmem:[#allocation7 + $0x5c0] sm:$0xff] }
  0x5f   :  { %410 = vmatprep.subr.mxu1 %v161_v59  ;;  %340 = vmatpush2.msra.mxu0 %v96_v60  ;;  %v241_v59 = vld [vmem:[#allocation7 + $0x5b8] sm:$0xff]  ;;  %v240_v60 = vld [vmem:[#allocation7 + $0x5b0] sm:$0xff]  ;;  %v219_v17 = vld [vmem:[#allocation7 + $0x508] sm:$0xff] }
  0x60   :  { %411 = vmatpush2.msra.mxu1 %v160_v61  ;;  %341 = vmatprep.subr.mxu0 %v95_v62  ;;  %v239_v61 = vld [vmem:[#allocation7 + $0x5a8] sm:$0xff]  ;;  %v238_v62 = vld [vmem:[#allocation7 + $0x5a0] sm:$0xff]  ;;  %v221_v15 = vld [vmem:[#allocation7 + $0x518] sm:$0xff] }
  0x61   :  { %412 = vmatprep.subr.mxu1 %v159_v63  ;;  %342 = vmatpush2.msra.mxu0 %v94_v1  ;;  %v237_v63 = vld [vmem:[#allocation7 + $0x598] sm:$0xff]  ;;  %v235_v1 = vld [vmem:[#allocation7 + $0x588] sm:$0xff] }
  0x62   :  { %413 = vmatpush2.msra.mxu1 %v158_v2  ;;  %343 = vmatprep.subr.mxu0 %v93_v4  ;;  %v234_v2 = vld [vmem:[#allocation7 + $0x580] sm:$0xff]  ;;  %v232_v4 = vld [vmem:[#allocation7 + $0x570] sm:$0xff] }
  0x63   :  { %414 = vmatprep.subr.mxu1 %v157_v5  ;;  %344 = vmatpush2.msra.mxu0 %v92_v6  ;;  %v231_v5 = vld [vmem:[#allocation7 + $0x568] sm:$0xff]  ;;  %v230_v6 = vld [vmem:[#allocation7 + $0x560] sm:$0xff] }
  0x64   :  { %415 = vmatpush2.msra.mxu1 %v156_v7  ;;  %345 = vmatprep.subr.mxu0 %v91_v8  ;;  %v229_v7 = vld [vmem:[#allocation7 + $0x558] sm:$0xff]  ;;  %v228_v8 = vld [vmem:[#allocation7 + $0x550] sm:$0xff] }
  0x65   :  { %416 = vmatprep.subr.mxu1 %v155_v9  ;;  %346 = vmatpush2.msra.mxu0 %v90_v11  ;;  %v227_v9 = vld [vmem:[#allocation7 + $0x548] sm:$0xff]  ;;  %v225_v11 = vld [vmem:[#allocation7 + $0x538] sm:$0xff] }
  0x66   :  { %347 = vmatprep.mubr.f32.mxu0 %v267_v10  ;;  %417 = vmatpush2.msra.mxu1 %v154_v13  ;;  %v226_v10 = vld [vmem:[#allocation7 + $0x540] sm:$0xff]  ;;  %v223_v13 = vld [vmem:[#allocation7 + $0x528] sm:$0xff] }
  0x67   :  { %418 = vmatprep.mubr.f32.mxu1 %v268_v12  ;;  %348 = vmatmul.mubr.f32.vlgmr.msra.gmra.mxu0 %v259_v0  ;;  %v236_v0 = vld [vmem:[#allocation7 + $0x590] sm:$0xff] }
  0x68   :  { %419 = vmatmul.mubr.f32.vlgmr.msra.gmra.mxu1 %v266_v3  ;;  %425 = vmatprep.subr.mxu0 %v217_v14  ;;  %v233_v3 = vld [vmem:[#allocation7 + $0x578] sm:$0xff]  ;;  %v224_v12 = vld [vmem:[#allocation7 + $0x530] sm:$0xff]  ;;  %v222_v14 = vld [vmem:[#allocation7 + $0x520] sm:$0xff] }
  0x69   :  { %426 = vmatpush1.msra.mxu0 %v216_v16  ;;  %489 = vmatprep.mubr.f32.mxu0 %v276_v25  ;;  %v220_v16 = vld [vmem:[#allocation7 + $0x510] sm:$0xff] }
  0x6a   :  { %427 = vmatprep.subr.mxu0 %v215_v18  ;;  %v218_v18 = vld [vmem:[#allocation7 + $0x500] sm:$0xff] }
  0x6b   :  { %428 = vmatpush1.msra.mxu0 %v214_v20 }
  0x6c   :  { %429 = vmatprep.subr.mxu0 %v213_v21 }
  0x6d   :  { %430 = vmatpush1.msra.mxu0 %v212_v23 }
  0x6e   :  { %431 = vmatprep.subr.mxu0 %v211_v24 }
  0x6f   :  { %432 = vmatpush1.msra.mxu0 %v210_v26 }
  0x70   :  { %433 = vmatprep.subr.mxu0 %v209_v27 }
  0x71   :  { %434 = vmatpush1.msra.mxu0 %v208_v28 }
  0x72   :  { %435 = vmatprep.subr.mxu0 %v207_v29 }
  0x73   :  { %436 = vmatpush1.msra.mxu0 %v206_v30 }
  0x74   :  { %437 = vmatprep.subr.mxu0 %v205_v31 }
  0x75   :  { %438 = vmatpush1.msra.mxu0 %v204_v32 }
  0x76   :  { %439 = vmatprep.subr.mxu0 %v203_v33 }
  0x77   :  { %440 = vmatpush1.msra.mxu0 %v202_v34 }
  0x78   :  { %441 = vmatprep.subr.mxu0 %v201_v35 }
  0x79   :  { %442 = vmatpush1.msra.mxu0 %v200_v36 }
  0x7a   :  { %443 = vmatprep.subr.mxu0 %v199_v37 }
  0x7b   :  { %444 = vmatpush1.msra.mxu0 %v198_v38 }
  0x7c   :  { %445 = vmatprep.subr.mxu0 %v197_v39 }
  0x7d   :  { %446 = vmatpush1.msra.mxu0 %v196_v40 }
  0x7e   :  { %447 = vmatprep.subr.mxu0 %v195_v41 }
  0x7f   :  { %448 = vmatpush1.msra.mxu0 %v194_v42 }
  0x80   :  { %449 = vmatprep.subr.mxu0 %v193_v43 }
  0x81   :  { %450 = vmatpush1.msra.mxu0 %v192_v44 }
  0x82   :  { %451 = vmatprep.subr.mxu0 %v191_v45 }
  0x83   :  { %452 = vmatpush1.msra.mxu0 %v190_v46 }
  0x84   :  { %453 = vmatprep.subr.mxu0 %v189_v47 }
  0x85   :  { %454 = vmatpush1.msra.mxu0 %v188_v48 }
  0x86   :  { %455 = vmatprep.subr.mxu0 %v187_v49 }
  0x87   :  { %456 = vmatpush1.msra.mxu0 %v186_v50 }
  0x88   :  { %457 = vmatprep.subr.mxu0 %v249_v51 }
  0x89   :  { %458 = vmatpush2.msra.mxu0 %v248_v52 }
  0x8a   :  { %459 = vmatprep.subr.mxu0 %v247_v53 }
  0x8b   :  { %460 = vmatpush2.msra.mxu0 %v246_v54 }
  0x8c   :  { %461 = vmatprep.subr.mxu0 %v245_v55 }
  0x8d   :  { %462 = vmatpush2.msra.mxu0 %v244_v56 }
  0x8e   :  { %463 = vmatprep.subr.mxu0 %v243_v57 }
  0x8f   :  { %464 = vmatpush2.msra.mxu0 %v242_v58 }
  0x90   :  { %465 = vmatprep.subr.mxu0 %v241_v59 }
  0x91   :  { %466 = vmatpush2.msra.mxu0 %v240_v60 }
  0x92   :  { %467 = vmatprep.subr.mxu0 %v239_v61 }
  0x93   :  { %468 = vmatpush2.msra.mxu0 %v238_v62 }
  0x94   :  { %469 = vmatprep.subr.mxu0 %v237_v63 }
  0x95   :  { %470 = vmatpush2.msra.mxu0 %v236_v0 }
  0x96   :  { %471 = vmatprep.subr.mxu0 %v235_v1 }
  0x97   :  { %472 = vmatpush2.msra.mxu0 %v234_v2 }
  0x98   :  { %473 = vmatprep.subr.mxu0 %v233_v3 }
  0x99   :  { %474 = vmatpush2.msra.mxu0 %v232_v4 }
  0x9a   :  { %475 = vmatprep.subr.mxu0 %v231_v5 }
  0x9b   :  { %476 = vmatpush2.msra.mxu0 %v230_v6 }
  0x9c   :  { %477 = vmatprep.subr.mxu0 %v229_v7 }
  0x9d   :  { %478 = vmatpush2.msra.mxu0 %v228_v8 }
  0x9e   :  { %479 = vmatprep.subr.mxu0 %v227_v9 }
  0x9f   :  { %480 = vmatpush2.msra.mxu0 %v226_v10 }
  0xa0   :  { %481 = vmatprep.subr.mxu0 %v225_v11 }
  0xa1   :  { %482 = vmatpush2.msra.mxu0 %v224_v12 }
  0xa2   :  { %483 = vmatprep.subr.mxu0 %v223_v13 }
  0xa3   :  { %484 = vmatpush2.msra.mxu0 %v222_v14 }
  0xa4   :  { %485 = vmatprep.subr.mxu0 %v221_v15 }
  0xa5   :  { %486 = vmatpush2.msra.mxu0 %v220_v16 }
  0xa6   :  { %487 = vmatprep.subr.mxu0 %v219_v17 }
  0xa7   :  { %488 = vmatpush2.msra.mxu0 %v218_v18 }
  0xa8   :  { %490 = vmatmul.mubr.f32.vlgmr.msra.gmra.mxu0 %v654_v22 }
 0x127   :  { %v349_v19 = vpop.f32.mrf.mxu0 }
 0x128   :  { %v420_v20 = vpop.f32.mrf.mxu1 }
 0x129   :  { %v351_v21 = vpop.f32.mrf.mxu0  ;;  %v421_v25 = vadd.f32 %v420_v20, %v349_v19 }
 0x12a   :  { %v422_v23 = vpop.f32.mrf.mxu1 }
 0x12b   :  { %v423_v26 = vadd.f32 %v422_v23, %v351_v21 }
 0x168   :  { %v491_v24 = vpop.f32.mrf.mxu0 }
 0x169   :  { %v492_v28 = vadd.f32 %v491_v24, %v421_v25 }
 0x16a   :  { %v493_v27 = vpop.f32.mrf.mxu0 }
 0x16b   :  { %v494_v29 = vadd.f32 %v493_v27, %v423_v26 }
 0x16d   :  { %v498_v30 = vcombine.low %v492_v28, %v494_v29 }
 0x16f   :  { %524 = vst.sshfl [vmem:[#allocation8] sm:$0x33 pattern:$0x76325410] %v498_v30 }
 0x170   :  { %603 = shalt.err (!%p600_p5)
}
 0x171   :  { %517 = dma.vmem_to_hbm [thread:$0]  %s515_s2, 64, %s665_s3, [#allocation4]  }
 0x172   :  { %616 = dma.done.wait [#allocation4], 64  }
 0x173   :  { %617 = vsyncadd [#allocation4], 4294967232 }
 0x174   :  { %521 = vsyncpa [#allocation3], 1 }
 0x175   :  { %522 = vsyncpa [#allocation6], 1 }
 0x176   :  { %523 = vsyncpa [#allocation4], 1 }

</bundles_post_ra>
